<compile_context>
chip_gen: v7x
topology: tpu7x:2x2x1
jax: 0.10.0
libtpu: 0.0.40
codegen_flags: <defaults>
</compile_context>

<pallas_src>
from typing import List, NamedTuple, Optional

import jax
import jax.numpy as jnp
from jax.experimental import pallas as pl
from jax.experimental.pallas import tpu as pltpu

LANE = 128  # TPU lane width; logits padded to this for a lane-dense output store.


class ModelOutputs(NamedTuple):
    """Forward model outputs (mirrors the PyTorch NamedTuple)."""
    forward_out: jax.Array
    perturbations: Optional[List[jax.Array]]


def _net_forward_pallas(x_nchw, wconv, bconv, wlin, blin):
    """Conv(3x3, pad=1) -> ReLU -> global avg pool -> Linear, fused in one Pallas kernel."""
    B, Cin, H, W = x_nchw.shape
    Cout = wconv.shape[0]
    ncls = wlin.shape[0]
    assert wconv.shape == (Cout, Cin, 3, 3)
    Hp, Wp = H + 2, W + 2
    rows = (B - 1) * Hp + H        # conv-accumulator rows (seam rows are junk, skipped later)
    ncp = W * Cout                 # conv-accumulator lanes (= 128 for W=16, Cout=8)

    # ---- wrapper glue (cheap XLA ops, NO im2col) -------------------------------------
    x_nhwc = jnp.transpose(x_nchw, (0, 2, 3, 1)).astype(jnp.float32)
    x_pad = jnp.pad(x_nhwc, ((0, 0), (1, 1), (1, 1), (0, 0)))
    x2d = x_pad.reshape(B * Hp, Wp * Cin)                       # [B*Hp, Wp*C]

    eye_w = jnp.eye(W, dtype=jnp.float32)
    # per-tap block-diagonal conv weights: [9, W*Cin, W*Cout]
    w1blk = jnp.stack([jnp.kron(eye_w, wconv[:, :, di, dj].T)
                       for di in range(3) for dj in range(3)])
    b1t = jnp.tile(bconv, (W,))[None, :]                        # [1, W*Cout]
    # fused avg-pool (1/(H*W)) + Linear weight, zero-padded to 128 lanes
    wf = jnp.tile(wlin.T, (W, 1)) / float(H * W)                # [W*Cout, ncls]
    wf = jnp.pad(wf, ((0, 0), (0, LANE - ncls)))                # [W*Cout, 128]
    b2p = jnp.pad(blin, (0, LANE - ncls))[None, :]              # [1, 128]

    def kernel(x_ref, w1_ref, b1_ref, wf_ref, b2_ref, out_ref):
        # f32 accumulator in vregs (single grid step -> no cross-step carry needed).
        acc = jnp.zeros((rows, ncp), jnp.float32)
        for t in range(9):                                       # 3x3 taps, statically unrolled
            di, dj = t // 3, t % 3
            xs = x_ref[di:di + rows, dj * Cin: dj * Cin + W * Cin]   # [rows, W*Cin], static slice
            acc = acc + jnp.dot(xs, w1_ref[t], preferred_element_type=jnp.float32)
        conv = jnp.maximum(acc + b1_ref[...], 0.0)               # bias + ReLU (VPU, f32)
        # per-image row sums over valid rows only (image seams excluded by the slices)
        sums = jnp.concatenate(
            [jnp.sum(conv[b * Hp: b * Hp + H, :], axis=0, keepdims=True)
             for b in range(B)], axis=0)                         # [B, 128]
        logits = jnp.dot(sums, wf_ref[...],
                         preferred_element_type=jnp.float32) + b2_ref[...]
        out_ref[...] = logits.astype(out_ref.dtype)              # lane-dense [B, 128] store

    flops = 2 * B * H * W * (Cin * 9) * Cout + 2 * B * ncp * LANE
    bytes_accessed = 4 * (x2d.size + w1blk.size + b1t.size + wf.size + b2p.size + B * LANE)

    out = pl.pallas_call(
        kernel,
        out_shape=jax.ShapeDtypeStruct((B, LANE), jnp.float32),
        grid=(1,),                                               # whole batch in one step
        in_specs=[
            pl.BlockSpec((B * Hp, Wp * Cin), lambda i: (0, 0)),
            pl.BlockSpec((9, W * Cin, ncp), lambda i: (0, 0, 0)),
            pl.BlockSpec((1, ncp), lambda i: (0, 0)),
            pl.BlockSpec((ncp, LANE), lambda i: (0, 0)),
            pl.BlockSpec((1, LANE), lambda i: (0, 0)),
        ],
        out_specs=pl.BlockSpec((B, LANE), lambda i: (0, 0)),
        compiler_params=pltpu.CompilerParams(dimension_semantics=("arbitrary",)),
        cost_estimate=pl.CostEstimate(flops=flops, transcendentals=0,
                                      bytes_accessed=bytes_accessed),
    )(x2d, w1blk, b1t, wf, b2p)

    return out[:, :ncls]                                         # drop lane padding in wrapper


_forward_jit = jax.jit(_net_forward_pallas)


def orchestrator_forward(x, wconv, bconv, wlin, blin) -> ModelOutputs:
    """ModelOrchestratorBase.forward: run net, return ModelOutputs(output, None)."""
    output = _forward_jit(x, wconv, bconv, wlin, blin)
    # No dummy tensor for the None perturbations field (inference path).
    return ModelOutputs(forward_out=output, perturbations=None)


def _reference_forward(x_nchw, wconv, bconv, wlin, blin):
    """Pure-JAX reference (matches the PyTorch net)."""
    x_nhwc = jnp.transpose(x_nchw, (0, 2, 3, 1)).astype(jnp.float32)
    w_hwio = jnp.transpose(wconv, (2, 3, 1, 0))
    y = jax.lax.conv_general_dilated(x_nhwc, w_hwio, (1, 1), "SAME",
                                     dimension_numbers=("NHWC", "HWIO", "NHWC"))
    y = jnp.maximum(y + bconv, 0.0)
    pooled = y.mean(axis=(1, 2))
    return pooled @ wlin.T + blin


if __name__ == "__main__":
    B, Cin, H, W = 2, 4, 16, 16
    Cout, NCLS = 8, 10

    key = jax.random.PRNGKey(0)
    kx, kw1, kb1, kw2, kb2 = jax.random.split(key, 5)
    x = jax.random.normal(kx, (B, Cin, H, W), dtype=jnp.float32)
    wconv = 0.1 * jax.random.normal(kw1, (Cout, Cin, 3, 3), dtype=jnp.float32)
    bconv = 0.1 * jax.random.normal(kb1, (Cout,), dtype=jnp.float32)
    wlin = 0.1 * jax.random.normal(kw2, (NCLS, Cout), dtype=jnp.float32)
    blin = 0.1 * jax.random.normal(kb2, (NCLS,), dtype=jnp.float32)

    outputs = orchestrator_forward(x, wconv, bconv, wlin, blin)
    logits = jax.block_until_ready(outputs.forward_out)

    ref = _reference_forward(x, wconv, bconv, wlin, blin)
    if logits.shape != (B, NCLS) or not bool(jnp.allclose(logits, ref, rtol=1e-2, atol=1e-2)):
        raise AssertionError("Pallas kernel does not match reference forward")
    assert outputs.perturbations is None
    print("KERNEL_OK")
</pallas_src>

<mosaic_0001>
module attributes {stable_mosaic.version = 11 : i64} {
  func.func @kernel(%arg0: i32, %arg1: memref<36x72xf32, #tpu.memory_space<vmem>>, %arg2: memref<9x64x128xf32, #tpu.memory_space<vmem>>, %arg3: memref<1x128xf32, #tpu.memory_space<vmem>>, %arg4: memref<128x128xf32, #tpu.memory_space<vmem>>, %arg5: memref<1x128xf32, #tpu.memory_space<vmem>>, %arg6: memref<2x128xf32, #tpu.memory_space<vmem>>) attributes {dimension_semantics = [#tpu.dimension_semantics<arbitrary>], iteration_bounds = array<i64: 1>, scalar_prefetch = 0 : i64, scratch_operands = 0 : i64, tpu.core_type = #tpu.core_type<tc>, window_params = [{pipeline_mode = #tpu.pipeline_mode<synchronous>, transform_indices = @transform_0, window_bounds = array<i64: 36, 72>}, {pipeline_mode = #tpu.pipeline_mode<synchronous>, transform_indices = @transform_1, window_bounds = array<i64: 9, 64, 128>}, {pipeline_mode = #tpu.pipeline_mode<synchronous>, transform_indices = @transform_2, window_bounds = array<i64: 1, 128>}, {pipeline_mode = #tpu.pipeline_mode<synchronous>, transform_indices = @transform_3, window_bounds = array<i64: 128, 128>}, {pipeline_mode = #tpu.pipeline_mode<synchronous>, transform_indices = @transform_4, window_bounds = array<i64: 1, 128>}, {pipeline_mode = #tpu.pipeline_mode<synchronous>, transform_indices = @transform_5, window_bounds = array<i64: 2, 128>}]} {
    %cst = arith.constant 0.000000e+00 : f32
    %0 = vector.broadcast %cst : f32 to vector<34x128xf32>
    %c0 = arith.constant 0 : index
    %c0_0 = arith.constant 0 : index
    %1 = vector.load %arg1[%c0, %c0_0] : memref<36x72xf32, #tpu.memory_space<vmem>>, vector<34x64xf32>
    %c0_1 = arith.constant 0 : index
    %c0_2 = arith.constant 0 : index
    %c0_3 = arith.constant 0 : index
    %2 = vector.load %arg2[%c0_1, %c0_2, %c0_3] : memref<9x64x128xf32, #tpu.memory_space<vmem>>, vector<1x64x128xf32>
    %3 = vector.shape_cast %2 : vector<1x64x128xf32> to vector<64x128xf32>
    %cst_4 = arith.constant dense<0.000000e+00> : vector<34x128xf32>
    %4 = tpu.matmul %1, %3, %cst_4 {dimension_numbers = #tpu.dot_dimension_numbers<[1], [0], [0], [1], [0, 0, 1, 1], [], []>} : vector<34x64xf32>, vector<64x128xf32>, vector<34x128xf32> -> vector<34x128xf32>
    %5 = arith.addf %0, %4 : vector<34x128xf32>
    %c0_5 = arith.constant 0 : index
    %c4 = arith.constant 4 : index
    %6 = vector.load %arg1[%c0_5, %c4] : memref<36x72xf32, #tpu.memory_space<vmem>>, vector<34x64xf32>
    %c1 = arith.constant 1 : index
    %c0_6 = arith.constant 0 : index
    %c0_7 = arith.constant 0 : index
    %7 = vector.load %arg2[%c1, %c0_6, %c0_7] : memref<9x64x128xf32, #tpu.memory_space<vmem>>, vector<1x64x128xf32>
    %8 = vector.shape_cast %7 : vector<1x64x128xf32> to vector<64x128xf32>
    %cst_8 = arith.constant dense<0.000000e+00> : vector<34x128xf32>
    %9 = tpu.matmul %6, %8, %cst_8 {dimension_numbers = #tpu.dot_dimension_numbers<[1], [0], [0], [1], [0, 0, 1, 1], [], []>} : vector<34x64xf32>, vector<64x128xf32>, vector<34x128xf32> -> vector<34x128xf32>
    %10 = arith.addf %5, %9 : vector<34x128xf32>
    %c0_9 = arith.constant 0 : index
    %c8 = arith.constant 8 : index
    %11 = vector.load %arg1[%c0_9, %c8] : memref<36x72xf32, #tpu.memory_space<vmem>>, vector<34x64xf32>
    %c2 = arith.constant 2 : index
    %c0_10 = arith.constant 0 : index
    %c0_11 = arith.constant 0 : index
    %12 = vector.load %arg2[%c2, %c0_10, %c0_11] : memref<9x64x128xf32, #tpu.memory_space<vmem>>, vector<1x64x128xf32>
    %13 = vector.shape_cast %12 : vector<1x64x128xf32> to vector<64x128xf32>
    %cst_12 = arith.constant dense<0.000000e+00> : vector<34x128xf32>
    %14 = tpu.matmul %11, %13, %cst_12 {dimension_numbers = #tpu.dot_dimension_numbers<[1], [0], [0], [1], [0, 0, 1, 1], [], []>} : vector<34x64xf32>, vector<64x128xf32>, vector<34x128xf32> -> vector<34x128xf32>
    %15 = arith.addf %10, %14 : vector<34x128xf32>
    %c1_13 = arith.constant 1 : index
    %c0_14 = arith.constant 0 : index
    %16 = vector.load %arg1[%c1_13, %c0_14] : memref<36x72xf32, #tpu.memory_space<vmem>>, vector<34x64xf32>
    %c3 = arith.constant 3 : index
    %c0_15 = arith.constant 0 : index
    %c0_16 = arith.constant 0 : index
    %17 = vector.load %arg2[%c3, %c0_15, %c0_16] : memref<9x64x128xf32, #tpu.memory_space<vmem>>, vector<1x64x128xf32>
    %18 = vector.shape_cast %17 : vector<1x64x128xf32> to vector<64x128xf32>
    %cst_17 = arith.constant dense<0.000000e+00> : vector<34x128xf32>
    %19 = tpu.matmul %16, %18, %cst_17 {dimension_numbers = #tpu.dot_dimension_numbers<[1], [0], [0], [1], [0, 0, 1, 1], [], []>} : vector<34x64xf32>, vector<64x128xf32>, vector<34x128xf32> -> vector<34x128xf32>
    %20 = arith.addf %15, %19 : vector<34x128xf32>
    %c1_18 = arith.constant 1 : index
    %c4_19 = arith.constant 4 : index
    %21 = vector.load %arg1[%c1_18, %c4_19] : memref<36x72xf32, #tpu.memory_space<vmem>>, vector<34x64xf32>
    %c4_20 = arith.constant 4 : index
    %c0_21 = arith.constant 0 : index
    %c0_22 = arith.constant 0 : index
    %22 = vector.load %arg2[%c4_20, %c0_21, %c0_22] : memref<9x64x128xf32, #tpu.memory_space<vmem>>, vector<1x64x128xf32>
    %23 = vector.shape_cast %22 : vector<1x64x128xf32> to vector<64x128xf32>
    %cst_23 = arith.constant dense<0.000000e+00> : vector<34x128xf32>
    %24 = tpu.matmul %21, %23, %cst_23 {dimension_numbers = #tpu.dot_dimension_numbers<[1], [0], [0], [1], [0, 0, 1, 1], [], []>} : vector<34x64xf32>, vector<64x128xf32>, vector<34x128xf32> -> vector<34x128xf32>
    %25 = arith.addf %20, %24 : vector<34x128xf32>
    %c1_24 = arith.constant 1 : index
    %c8_25 = arith.constant 8 : index
    %26 = vector.load %arg1[%c1_24, %c8_25] : memref<36x72xf32, #tpu.memory_space<vmem>>, vector<34x64xf32>
    %c5 = arith.constant 5 : index
    %c0_26 = arith.constant 0 : index
    %c0_27 = arith.constant 0 : index
    %27 = vector.load %arg2[%c5, %c0_26, %c0_27] : memref<9x64x128xf32, #tpu.memory_space<vmem>>, vector<1x64x128xf32>
    %28 = vector.shape_cast %27 : vector<1x64x128xf32> to vector<64x128xf32>
    %cst_28 = arith.constant dense<0.000000e+00> : vector<34x128xf32>
    %29 = tpu.matmul %26, %28, %cst_28 {dimension_numbers = #tpu.dot_dimension_numbers<[1], [0], [0], [1], [0, 0, 1, 1], [], []>} : vector<34x64xf32>, vector<64x128xf32>, vector<34x128xf32> -> vector<34x128xf32>
    %30 = arith.addf %25, %29 : vector<34x128xf32>
    %c2_29 = arith.constant 2 : index
    %c0_30 = arith.constant 0 : index
    %31 = vector.load %arg1[%c2_29, %c0_30] : memref<36x72xf32, #tpu.memory_space<vmem>>, vector<34x64xf32>
    %c6 = arith.constant 6 : index
    %c0_31 = arith.constant 0 : index
    %c0_32 = arith.constant 0 : index
    %32 = vector.load %arg2[%c6, %c0_31, %c0_32] : memref<9x64x128xf32, #tpu.memory_space<vmem>>, vector<1x64x128xf32>
    %33 = vector.shape_cast %32 : vector<1x64x128xf32> to vector<64x128xf32>
    %cst_33 = arith.constant dense<0.000000e+00> : vector<34x128xf32>
    %34 = tpu.matmul %31, %33, %cst_33 {dimension_numbers = #tpu.dot_dimension_numbers<[1], [0], [0], [1], [0, 0, 1, 1], [], []>} : vector<34x64xf32>, vector<64x128xf32>, vector<34x128xf32> -> vector<34x128xf32>
    %35 = arith.addf %30, %34 : vector<34x128xf32>
    %c2_34 = arith.constant 2 : index
    %c4_35 = arith.constant 4 : index
    %36 = vector.load %arg1[%c2_34, %c4_35] : memref<36x72xf32, #tpu.memory_space<vmem>>, vector<34x64xf32>
    %c7 = arith.constant 7 : index
    %c0_36 = arith.constant 0 : index
    %c0_37 = arith.constant 0 : index
    %37 = vector.load %arg2[%c7, %c0_36, %c0_37] : memref<9x64x128xf32, #tpu.memory_space<vmem>>, vector<1x64x128xf32>
    %38 = vector.shape_cast %37 : vector<1x64x128xf32> to vector<64x128xf32>
    %cst_38 = arith.constant dense<0.000000e+00> : vector<34x128xf32>
    %39 = tpu.matmul %36, %38, %cst_38 {dimension_numbers = #tpu.dot_dimension_numbers<[1], [0], [0], [1], [0, 0, 1, 1], [], []>} : vector<34x64xf32>, vector<64x128xf32>, vector<34x128xf32> -> vector<34x128xf32>
    %40 = arith.addf %35, %39 : vector<34x128xf32>
    %c2_39 = arith.constant 2 : index
    %c8_40 = arith.constant 8 : index
    %41 = vector.load %arg1[%c2_39, %c8_40] : memref<36x72xf32, #tpu.memory_space<vmem>>, vector<34x64xf32>
    %c8_41 = arith.constant 8 : index
    %c0_42 = arith.constant 0 : index
    %c0_43 = arith.constant 0 : index
    %42 = vector.load %arg2[%c8_41, %c0_42, %c0_43] : memref<9x64x128xf32, #tpu.memory_space<vmem>>, vector<1x64x128xf32>
    %43 = vector.shape_cast %42 : vector<1x64x128xf32> to vector<64x128xf32>
    %cst_44 = arith.constant dense<0.000000e+00> : vector<34x128xf32>
    %44 = tpu.matmul %41, %43, %cst_44 {dimension_numbers = #tpu.dot_dimension_numbers<[1], [0], [0], [1], [0, 0, 1, 1], [], []>} : vector<34x64xf32>, vector<64x128xf32>, vector<34x128xf32> -> vector<34x128xf32>
    %45 = arith.addf %40, %44 : vector<34x128xf32>
    %c0_45 = arith.constant 0 : index
    %c0_46 = arith.constant 0 : index
    %46 = vector.load %arg3[%c0_45, %c0_46] : memref<1x128xf32, #tpu.memory_space<vmem>>, vector<1x128xf32>
    %47 = vector.broadcast %46 : vector<1x128xf32> to vector<34x128xf32>
    %48 = arith.addf %45, %47 : vector<34x128xf32>
    %cst_47 = arith.constant 0.000000e+00 : f32
    %49 = vector.broadcast %cst_47 : f32 to vector<34x128xf32>
    %50 = arith.maximumf %48, %49 : vector<34x128xf32>
    %51 = vector.extract_strided_slice %50 {offsets = [0, 0], sizes = [16, 128], strides = [1, 1]} : vector<34x128xf32> to vector<16x128xf32>
    %cst_48 = arith.constant dense<0.000000e+00> : vector<128xf32>
    %52 = vector.multi_reduction <add>, %51, %cst_48 [0] : vector<16x128xf32> to vector<128xf32>
    %53 = vector.shape_cast %52 : vector<128xf32> to vector<1x128xf32>
    %54 = vector.extract_strided_slice %50 {offsets = [18, 0], sizes = [16, 128], strides = [1, 1]} : vector<34x128xf32> to vector<16x128xf32>
    %cst_49 = arith.constant dense<0.000000e+00> : vector<128xf32>
    %55 = vector.multi_reduction <add>, %54, %cst_49 [0] : vector<16x128xf32> to vector<128xf32>
    %56 = vector.shape_cast %55 : vector<128xf32> to vector<1x128xf32>
    %57 = tpu.concatenate %53, %56 in 0 : vector<1x128xf32>, vector<1x128xf32> -> vector<2x128xf32>
    %c0_50 = arith.constant 0 : index
    %c0_51 = arith.constant 0 : index
    %58 = vector.load %arg4[%c0_50, %c0_51] : memref<128x128xf32, #tpu.memory_space<vmem>>, vector<128x128xf32>
    %cst_52 = arith.constant dense<0.000000e+00> : vector<2x128xf32>
    %59 = tpu.matmul %57, %58, %cst_52 {dimension_numbers = #tpu.dot_dimension_numbers<[1], [0], [0], [1], [0, 0, 1, 1], [], []>} : vector<2x128xf32>, vector<128x128xf32>, vector<2x128xf32> -> vector<2x128xf32>
    %c0_53 = arith.constant 0 : index
    %c0_54 = arith.constant 0 : index
    %60 = vector.load %arg5[%c0_53, %c0_54] : memref<1x128xf32, #tpu.memory_space<vmem>>, vector<1x128xf32>
    %61 = vector.broadcast %60 : vector<1x128xf32> to vector<2x128xf32>
    %62 = arith.addf %59, %61 : vector<2x128xf32>
    %c0_55 = arith.constant 0 : index
    %c0_56 = arith.constant 0 : index
    %63 = vector.load %arg6[%c0_55, %c0_56] : memref<2x128xf32, #tpu.memory_space<vmem>>, vector<2x128xf32>
    tpu.vector_store %arg6[%c0_55, %c0_56], %62 {strides = array<i32>} : memref<2x128xf32, #tpu.memory_space<vmem>>, vector<2x128xf32>,
    return
  }
  func.func @transform_0(%arg0: i32) -> (i32, i32) {
    %c0_i32 = arith.constant 0 : i32
    %c0_i32_0 = arith.constant 0 : i32
    %c0_i32_1 = arith.constant 0 : i32
    return %c0_i32, %c0_i32_0 : i32, i32
  }
  func.func @transform_1(%arg0: i32) -> (i32, i32, i32) {
    %c0_i32 = arith.constant 0 : i32
    %c0_i32_0 = arith.constant 0 : i32
    %c0_i32_1 = arith.constant 0 : i32
    %c0_i32_2 = arith.constant 0 : i32
    return %c0_i32, %c0_i32_0, %c0_i32_1 : i32, i32, i32
  }
  func.func @transform_2(%arg0: i32) -> (i32, i32) {
    %c0_i32 = arith.constant 0 : i32
    %c0_i32_0 = arith.constant 0 : i32
    %c0_i32_1 = arith.constant 0 : i32
    return %c0_i32, %c0_i32_0 : i32, i32
  }
  func.func @transform_3(%arg0: i32) -> (i32, i32) {
    %c0_i32 = arith.constant 0 : i32
    %c0_i32_0 = arith.constant 0 : i32
    %c0_i32_1 = arith.constant 0 : i32
    return %c0_i32, %c0_i32_0 : i32, i32
  }
  func.func @transform_4(%arg0: i32) -> (i32, i32) {
    %c0_i32 = arith.constant 0 : i32
    %c0_i32_0 = arith.constant 0 : i32
    %c0_i32_1 = arith.constant 0 : i32
    return %c0_i32, %c0_i32_0 : i32, i32
  }
  func.func @transform_5(%arg0: i32) -> (i32, i32) {
    %c0_i32 = arith.constant 0 : i32
    %c0_i32_0 = arith.constant 0 : i32
    %c0_i32_1 = arith.constant 0 : i32
    return %c0_i32, %c0_i32_0 : i32, i32
  }
}

</mosaic_0001>

<bundles_post_ra>
// kernel: tile.13
= control target key start
LH: loop header
LB: loop body
LE: loop exit
PB: predicated region body
PF: predicated region fallthrough
CT: control target
= control target key end

     0   :  { %s28_s0 = inlined_call_operand.vmem [shape: f32[8], index: 0, kind: input, shape index: {}]   ;;  %s29_s1 = inlined_call_operand.vmem [shape: f32[16,8], index: 1, kind: output, shape index: {}]  }
   0x1   :  { %v4_v0 = vld [vmem:[%s28_s0] ss:$0 sm:$0xff] }
   0x2   :  { %5 = vst [vmem:[%s29_s1] sm:$0xff] %v4_v0  ;;  %8 = vst [vmem:[%s29_s1 + $0x8] sm:$0xff] %v4_v0 }

// kernel: tile.14
= control target key start
LH: loop header
LB: loop body
LE: loop exit
PB: predicated region body
PF: predicated region fallthrough
CT: control target
= control target key end

     0   :  { %s131_s10 = smov 120   ;;  %s132_s11 = smov 104   ;;  %vm3_vm0 = vcmask 64512   ;;  %vm9_vm1 = vcmask 1048512   ;;  %vm15_vm2 = vcmask 982912   ;;  %vm21_vm3 = vcmask 917312   ;;  %s207_s0 = inlined_call_operand.vmem [shape: f32[16,8], index: 0, kind: input, shape index: {}]   ;;  %s208_s1 = inlined_call_operand.vmem [shape: f32[1,128], index: 1, kind: output, shape index: {}]  }
   0x1   :  { %v101_v0 = vld [vmem:[%s207_s0 + $0xf] sm:$0x1]   ;;  %v103_v1 = vld [vmem:[%s207_s0 + $0xd] sm:$0x1]   ;;  %v102_v2 = vld [vmem:[%s207_s0 + $0xe] sm:$0x1]  }
   0x2   :  { %7 = vrot.lane.b32.xlu0 %v101_v0, %s131_s10  ;;  %19 = vrot.lane.b32.xlu1 %v103_v1, %s132_s11  ;;  %v104_v3 = vld [vmem:[%s207_s0 + $0xc] sm:$0x1]   ;;  %s133_s16 = smov 112   ;;  %s134_s17 = smov 96   ;;  %v105_v4 = vld [vmem:[%s207_s0 + $0xb] sm:$0x1]  }
   0x3   :  { %v106_v5 = vld [vmem:[%s207_s0 + $0xa] sm:$0x1]   ;;  %v2_v6 = vld [vmem:[%s207_s0] sm:$0x1]   ;;  %s135_s24 = smov 88   ;;  %s136_s25 = smov 80  }
   0x4   :  { %4 = vst.msk [vmem:[#allocation0] sm:$0x1] %vm3_vm0, %v2_v6   ;;  %v107_v7 = vld [vmem:[%s207_s0 + $0x9] sm:$0x1]   ;;  %v108_v8 = vld [vmem:[%s207_s0 + $0x8] sm:$0x1]  }
   0x5   :  { %s137_s30 = smov 72   ;;  %s138_s2 = smov 64   ;;  %v109_v9 = vld [vmem:[%s207_s0 + $0x7] sm:$0x1]   ;;  %v110_v10 = vld [vmem:[%s207_s0 + $0x6] sm:$0x1]  }
   0x6   :  { %13 = vrot.lane.b32.xlu0 %v102_v2, %s133_s16  ;;  %25 = vrot.lane.b32.xlu1 %v104_v3, %s134_s17  ;;  %s139_s7 = smov 56   ;;  %s140_s8 = smov 48   ;;  %v111_v11 = vld [vmem:[%s207_s0 + $0x5] sm:$0x1]   ;;  %v112_v12 = vld [vmem:[%s207_s0 + $0x4] sm:$0x1]  }
   0x7   :  { %s141_s13 = smov 40   ;;  %s142_s14 = smov 32   ;;  %v113_v13 = vld [vmem:[%s207_s0 + $0x3] sm:$0x1]   ;;  %v114_v14 = vld [vmem:[%s207_s0 + $0x2] sm:$0x1]  }
   0x8   :  { %s143_s19 = smov 24   ;;  %s144_s20 = smov 16   ;;  %v115_v15 = vld [vmem:[%s207_s0 + $0x1] sm:$0x1]   ;;  %vm27_vm4 = vcmask 851712   ;;  %vm33_vm5 = vcmask 786112  }
   0x9   :  { %s145_s0 = smov 8   ;;  %vm39_vm6 = vcmask 720512   ;;  %vm45_vm7 = vcmask 654912   ;;  %vm51_vm8 = vcmask 589312   ;;  %vm57_vm9 = vcmask 523712  }
   0xa   :  { %31 = vrot.lane.b32.xlu0 %v105_v4, %s135_s24  ;;  %37 = vrot.lane.b32.xlu1 %v106_v5, %s136_s25  ;;  %vm63_vm10 = vcmask 458112   ;;  %vm69_vm11 = vcmask 392512   ;;  %vm75_vm12 = vcmask 326912   ;;  %vm81_vm13 = vcmask 261312  }
   0xb   :  { %vm87_vm14 = vcmask 195712   ;;  %vm93_vm15 = vcmask 130112  }
   0xe   :  { %43 = vrot.lane.b32.xlu0 %v107_v7, %s137_s30  ;;  %49 = vrot.lane.b32.xlu1 %v108_v8, %s138_s2 }
  0x12   :  { %55 = vrot.lane.b32.xlu0 %v109_v9, %s139_s7  ;;  %61 = vrot.lane.b32.xlu1 %v110_v10, %s140_s8 }
  0x16   :  { %67 = vrot.lane.b32.xlu0 %v111_v11, %s141_s13  ;;  %73 = vrot.lane.b32.xlu1 %v112_v12, %s142_s14 }
  0x1a   :  { %79 = vrot.lane.b32.xlu0 %v113_v13, %s143_s19  ;;  %85 = vrot.lane.b32.xlu1 %v114_v14, %s144_s20 }
  0x1e   :  { %91 = vrot.lane.b32.xlu0 %v115_v15, %s145_s0 }
  0x74   :  { %v8_v16 = vpop.permute.xlu0 %7   ;;  %v20_v17 = vpop.permute.xlu1 %19  }
  0x75   :  { %10 = vst.msk [vmem:[#allocation0] sm:$0x1] %vm9_vm1, %v8_v16  }
  0x78   :  { %v14_v18 = vpop.permute.xlu0 %13   ;;  %v26_v19 = vpop.permute.xlu1 %25  }
  0x79   :  { %16 = vst.msk [vmem:[#allocation0] sm:$0x1] %vm15_vm2, %v14_v18  }
  0x7a   :  { %22 = vst.msk [vmem:[#allocation0] sm:$0x1] %vm21_vm3, %v20_v17  }
  0x7b   :  { %28 = vst.msk [vmem:[#allocation0] sm:$0x1] %vm27_vm4, %v26_v19  }
  0x7c   :  { %v32_v20 = vpop.permute.xlu0 %31   ;;  %v38_v21 = vpop.permute.xlu1 %37  }
  0x7d   :  { %34 = vst.msk [vmem:[#allocation0] sm:$0x1] %vm33_vm5, %v32_v20  }
  0x7e   :  { %40 = vst.msk [vmem:[#allocation0] sm:$0x1] %vm39_vm6, %v38_v21  }
  0x80   :  { %v44_v22 = vpop.permute.xlu0 %43   ;;  %v50_v23 = vpop.permute.xlu1 %49  }
  0x81   :  { %46 = vst.msk [vmem:[#allocation0] sm:$0x1] %vm45_vm7, %v44_v22  }
  0x82   :  { %52 = vst.msk [vmem:[#allocation0] sm:$0x1] %vm51_vm8, %v50_v23  }
  0x84   :  { %v56_v24 = vpop.permute.xlu0 %55   ;;  %v62_v25 = vpop.permute.xlu1 %61  }
  0x85   :  { %58 = vst.msk [vmem:[#allocation0] sm:$0x1] %vm57_vm9, %v56_v24  }
  0x86   :  { %64 = vst.msk [vmem:[#allocation0] sm:$0x1] %vm63_vm10, %v62_v25  }
  0x88   :  { %v68_v26 = vpop.permute.xlu0 %67   ;;  %v74_v27 = vpop.permute.xlu1 %73  }
  0x89   :  { %70 = vst.msk [vmem:[#allocation0] sm:$0x1] %vm69_vm11, %v68_v26  }
  0x8a   :  { %76 = vst.msk [vmem:[#allocation0] sm:$0x1] %vm75_vm12, %v74_v27  }
  0x8c   :  { %v80_v28 = vpop.permute.xlu0 %79   ;;  %v86_v29 = vpop.permute.xlu1 %85  }
  0x8d   :  { %82 = vst.msk [vmem:[#allocation0] sm:$0x1] %vm81_vm13, %v80_v28  }
  0x8e   :  { %88 = vst.msk [vmem:[#allocation0] sm:$0x1] %vm87_vm14, %v86_v29  }
  0x90   :  { %v92_v30 = vpop.permute.xlu0 %91  }
  0x91   :  { %94 = vst.msk [vmem:[#allocation0] sm:$0x1] %vm93_vm15, %v92_v30  }
  0x98   :  { %v98_v31 = vld [vmem:[#allocation0] sm:$0x1] }
  0x99   :  { %100 = vst [vmem:[%s208_s1] sm:$0x1] %v98_v31 }

// kernel: _net_forward_pallas.1
= control target key start
LH: loop header
LB: loop body
LE: loop exit
PB: predicated region body
PF: predicated region fallthrough
CT: control target
= control target key end

     0   :  { %s2000_s22 = smov 124   ;;  %v2001_v4 = vmov 0.0|0.0   ;;  %vm2002_vm0 = vmmov 0   ;;  %v2003_v5 = vmov 0.0   ;;  %s2004_s20 = smov 120   ;;  %s2682_s0 = inlined_call_operand.vmem [shape: f32[36,72], index: 0, kind: input, shape index: {}]   ;;  %s2683_s1 = inlined_call_operand.vmem [shape: f32[9,64,128], index: 1, kind: input, shape index: {}]   ;;  %s2684_s2 = inlined_call_operand.vmem [shape: f32[1,128], index: 2, kind: input, shape index: {}]   ;;  %s2685_s3 = inlined_call_operand.vmem [shape: f32[128,128], index: 3, kind: input, shape index: {}]   ;;  %s2686_s4 = inlined_call_operand.vmem [shape: f32[1,128], index: 4, kind: input, shape index: {}]   ;;  %s2687_s5 = inlined_call_operand.hbm [shape: f32[2,128], index: 5, kind: output, shape index: {}]  }
   0x1   :  { %v2039_v0 = vld [vmem:[%s2682_s0] sm:$0xff]  ;;  %v2044_v1 = vld [vmem:[%s2682_s0 + $0x10] sm:$0xff]  ;;  %v2053_v2 = vld [vmem:[%s2682_s0 + $0x8] sm:$0xff]  ;;  %1838 = vmatprep.subr.bf16.mxu0 %v2001_v4  ;;  %1850 = vmatprep.subr.bf16.mxu1 %v2001_v4 }
   0x2   :  { %48 = vrot.lane.b32.xlu0 %v2039_v0, %s2000_s22  ;;  %52 = vrot.lane.b32.xlu1 %v2044_v1, %s2000_s22  ;;  %v2058_v3 = vld [vmem:[%s2682_s0 + $0x18] sm:$0xff]  ;;  %v2073_v6 = vld [vmem:[%s2682_s0 + $0x20] sm:$0x3] }
   0x3   :  { %1540 = vmatprep.mubr.msk.f32.mxu0 %vm2002_vm0, %v2003_v5  ;;  %1571 = vmatprep.mubr.msk.f32.mxu1 %vm2002_vm0, %v2003_v5  ;;  %v1279_v7 = vld [vmem:[%s2683_s1 + $0x40] sm:$0xff]  ;;  %v1280_v8 = vld [vmem:[%s2683_s1 + $0x48] sm:$0xff]  ;;  %v1281_v13 = vld [vmem:[%s2683_s1 + $0x50] sm:$0xff] }
   0x4   :  { %v26_v9 = vld [vmem:[%s2683_s1] sm:$0xff]  ;;  %v27_v10 = vld [vmem:[%s2683_s1 + $0x8] sm:$0xff]  ;;  %v1839_v11 = vpack.c.bf16 %v1280_v8, %v1279_v7  ;;  %v1282_v14 = vld [vmem:[%s2683_s1 + $0x58] sm:$0xff] }
   0x5   :  { %v1851_v12 = vpack.c.bf16 %v27_v10, %v26_v9  ;;  %v28_v15 = vld [vmem:[%s2683_s1 + $0x10] sm:$0xff]  ;;  %v29_v16 = vld [vmem:[%s2683_s1 + $0x18] sm:$0xff]  ;;  %v1842_v17 = vpack.c.bf16 %v1282_v14, %v1281_v13  ;;  %v1283_v19 = vld [vmem:[%s2683_s1 + $0x60] sm:$0xff] }
   0x6   :  { %50 = vrot.lane.b32.xlu0 %v2053_v2, %s2000_s22  ;;  %54 = vrot.lane.b32.xlu1 %v2058_v3, %s2000_s22  ;;  %v1854_v18 = vpack.c.bf16 %v29_v16, %v28_v15  ;;  %v1284_v20 = vld [vmem:[%s2683_s1 + $0x68] sm:$0xff]  ;;  %v30_v21 = vld [vmem:[%s2683_s1 + $0x20] sm:$0xff] }
   0x7   :  { %1840 = vmatpush3.bf16.msra.mxu0 %v1839_v11  ;;  %1852 = vmatpush3.bf16.msra.mxu1 %v1851_v12  ;;  %v31_v22 = vld [vmem:[%s2683_s1 + $0x28] sm:$0xff]  ;;  %v1845_v23 = vpack.c.bf16 %v1284_v20, %v1283_v19  ;;  %v1285_v25 = vld [vmem:[%s2683_s1 + $0x70] sm:$0xff]  ;;  %v1286_v26 = vld [vmem:[%s2683_s1 + $0x78] sm:$0xff] }
   0x8   :  { %1841 = vmatprep.subr.bf16.mxu0 %v2001_v4  ;;  %1853 = vmatprep.subr.bf16.mxu1 %v2001_v4  ;;  %v1857_v24 = vpack.c.bf16 %v31_v22, %v30_v21  ;;  %v32_v27 = vld [vmem:[%s2683_s1 + $0x30] sm:$0xff]  ;;  %v33_v28 = vld [vmem:[%s2683_s1 + $0x38] sm:$0xff]  ;;  %v2147_v30 = vld [vmem:[%s2682_s0 + $0x1] sm:$0xff]  ;;  %v1848_v31 = vpack.c.bf16 %v1286_v26, %v1285_v25 }
   0x9   :  { %v2142_v29 = vld [vmem:[%s2682_s0 + $0x9] sm:$0xff]  ;;  %v1860_v32 = vpack.c.bf16 %v33_v28, %v32_v27  ;;  %v1310_v33 = vld [vmem:[%s2683_s1 + $0xc0] sm:$0xff]  ;;  %v2169_v36 = vld [vmem:[%s2682_s0 + $0x11] sm:$0xff] }
   0xa   :  { %56 = vrot.lane.b32.xlu0 %v2073_v6, %s2000_s22  ;;  %268 = vrot.lane.b32.xlu1 %v2039_v0, %s2004_s20  ;;  %v1311_v34 = vld [vmem:[%s2683_s1 + $0xc8] sm:$0xff]  ;;  %v2164_v35 = vld [vmem:[%s2682_s0 + $0x19] sm:$0xff] }
   0xb   :  { %1843 = vmatpush3.bf16.msra.mxu0 %v1842_v17  ;;  %1855 = vmatpush3.bf16.msra.mxu1 %v1854_v18 }
   0xc   :  { %1844 = vmatprep.subr.bf16.mxu0 %v2001_v4  ;;  %1856 = vmatprep.subr.bf16.mxu1 %v2001_v4 }
   0xe   :  { %270 = vrot.lane.b32.xlu0 %v2053_v2, %s2004_s20  ;;  %272 = vrot.lane.b32.xlu1 %v2044_v1, %s2004_s20 }
   0xf   :  { %1846 = vmatpush3.bf16.msra.mxu0 %v1845_v23  ;;  %1858 = vmatpush3.bf16.msra.mxu1 %v1857_v24 }
  0x10   :  { %1847 = vmatprep.subr.bf16.mxu0 %v2001_v4  ;;  %1859 = vmatprep.subr.bf16.mxu1 %v2001_v4 }
  0x12   :  { %276 = vrot.lane.b32.xlu1 %v2073_v6, %s2004_s20  ;;  %274 = vrot.lane.b32.xlu0 %v2058_v3, %s2004_s20 }
  0x13   :  { %1849 = vmatpush3.bf16.msra.mxu0 %v1848_v31  ;;  %1861 = vmatpush3.bf16.msra.mxu1 %v1860_v32 }
  0x16   :  { %518 = vrot.lane.b32.xlu1 %v2142_v29, %s2000_s22  ;;  %516 = vrot.lane.b32.xlu0 %v2147_v30, %s2000_s22 }
  0x17   :  { %10 = vsyncpa [#allocation3], 0  ;;  %1862 = vmatprep.subr.bf16.mxu0 %v2001_v4  ;;  %vm58_vm1 = vcmask 523264   ;;  %1874 = vmatprep.subr.bf16.mxu1 %v2001_v4  ;;  %v1875_v37 = vpack.c.bf16 %v1311_v34, %v1310_v33  ;;  %v1312_v38 = vld [vmem:[%s2683_s1 + $0xd0] sm:$0xff]  ;;  %v1313_v39 = vld [vmem:[%s2683_s1 + $0xd8] sm:$0xff]  ;;  %vm1154_vm2 = vcmask 1045504  }
  0x18   :  { %v2186_v40 = vld [vmem:[%s2682_s0 + $0x21] sm:$0x3]  ;;  %1572 = vmatmul.mubr.msk.f32.vlgmr.msra.gmra.mrb[0].mxu1 %vm58_vm1, %v2039_v0  ;;  %v1878_v41 = vpack.c.bf16 %v1313_v39, %v1312_v38  ;;  %v1315_v43 = vld [vmem:[%s2683_s1 + $0xe8] sm:$0xff]  ;;  %v1316_v45 = vld [vmem:[%s2683_s1 + $0xf0] sm:$0xff]  ;;  %vm1169_vm3 = vcmask 1040384   ;;  %s2005_s26 = smov [#allocation2]  }
  0x19   :  { %1574 = vmatprep.mubr.msk.f32.mxu1 %vm2002_vm0, %v2003_v5  ;;  %1876 = vmatpush3.bf16.msra.mxu1 %v1875_v37  ;;  %v1314_v42 = vld [vmem:[%s2683_s1 + $0xe0] sm:$0xff]  ;;  %v1317_v46 = vld [vmem:[%s2683_s1 + $0xf8] sm:$0xff]  ;;  %v1337_v50 = vld [vmem:[%s2683_s1 + $0x148] sm:$0xff]  ;;  %s1271_s27 = sshll.u32 %s2005_s26, 4  ;;  %s1272_s27 = int_to_ptr.vmem [resolvable:$true] %s1271_s27 }
  0x1a   :  { %522 = vrot.lane.b32.xlu1 %v2164_v35, %s2000_s22  ;;  %520 = vrot.lane.b32.xlu0 %v2169_v36, %s2000_s22  ;;  %v1881_v44 = vpack.c.bf16 %v1315_v43, %v1314_v42  ;;  %v1884_v47 = vpack.c.bf16 %v1317_v46, %v1316_v45  ;;  %v2230_v48 = vld [vmem:[%s2682_s0 + $0x2] sm:$0xff]  ;;  %v2250_v51 = vld [vmem:[%s2682_s0 + $0xa] sm:$0xff]  ;;  %s1976_s28 = scalar_lea.vmem %s1272_s27, 32  ;;  %p1981_p1 = scmp.lt.s32.totalorder %s1272_s27, %s1272_s27 }
  0x1b   :  { %1877 = vmatprep.subr.bf16.mxu1 %v2001_v4  ;;  %v1336_v49 = vld [vmem:[%s2683_s1 + $0x140] sm:$0xff]  ;;  %v1338_v53 = vld [vmem:[%s2683_s1 + $0x150] sm:$0xff]  ;;  %v1339_v54 = vld [vmem:[%s2683_s1 + $0x158] sm:$0xff]  ;;  %p1977_p0 = scmp.ne.s32.totalorder %s1272_s27, %s1976_s28  ;;  %p1982_p2 = scmp.lt.s32.totalorder %s1976_s28, %s1976_s28 }
  0x1c   :  { %1575 = vmatmul.mubr.msk.f32.gmra.mrb[2].mxu1 %vm58_vm1, %v2053_v2  ;;  %v1899_v52 = vpack.c.bf16 %v1337_v50, %v1336_v49  ;;  %v2269_v55 = vld [vmem:[%s2682_s0 + $0x12] sm:$0xff]  ;;  %v1902_v56 = vpack.c.bf16 %v1339_v54, %v1338_v53  ;;  %v1340_v57 = vld [vmem:[%s2683_s1 + $0x160] sm:$0xff]  ;;  %v1341_v58 = vld [vmem:[%s2683_s1 + $0x168] sm:$0xff] }
  0x1d   :  { %1577 = vmatprep.mubr.msk.f32.mxu1 %vm2002_vm0, %v2003_v5  ;;  %1879 = vmatpush3.bf16.msra.mxu1 %v1878_v41  ;;  %v2289_v59 = vld [vmem:[%s2682_s0 + $0x1a] sm:$0xff]  ;;  %v1905_v60 = vpack.c.bf16 %v1341_v58, %v1340_v57  ;;  %v1342_v61 = vld [vmem:[%s2683_s1 + $0x170] sm:$0xff]  ;;  %v2309_v63 = vld [vmem:[%s2682_s0 + $0x22] sm:$0x3]  ;;  %p1983_p3 = por %p1982_p2, %p1981_p1 }
  0x1e   :  { %640 = vrot.lane.b32.xlu1 %v2147_v30, %s2004_s20  ;;  %524 = vrot.lane.b32.xlu0 %v2186_v40, %s2000_s22  ;;  %v1343_v62 = vld [vmem:[%s2683_s1 + $0x178] sm:$0xff]  ;;  %v1298_v2 = vld [vmem:[%s2683_s1 + $0x88] sm:$0xff] }
  0x1f   :  { %1880 = vmatprep.subr.bf16.mxu1 %v2001_v4  ;;  %v1908_v0 = vpack.c.bf16 %v1343_v62, %v1342_v61  ;;  %v1300_v7 = vld [vmem:[%s2683_s1 + $0x98] sm:$0xff]  ;;  %v1301_v11 = vld [vmem:[%s2683_s1 + $0xa0] sm:$0xff]  ;;  %v1302_v12 = vld [vmem:[%s2683_s1 + $0xa8] sm:$0xff]  ;;  %p1984_p4 = pnand %p1983_p3, %p1977_p0 }
  0x20   :  { %1578 = vmatmul.mubr.msk.f32.gmra.mrb[4].mxu1 %vm58_vm1, %v2044_v1  ;;  %v1297_v1 = vld [vmem:[%s2683_s1 + $0x80] sm:$0xff]  ;;  %v1869_v15 = vpack.c.bf16 %v1302_v12, %v1301_v11  ;;  %v1303_v16 = vld [vmem:[%s2683_s1 + $0xb0] sm:$0xff]  ;;  %v1304_v17 = vld [vmem:[%s2683_s1 + $0xb8] sm:$0xff] }
  0x21   :  { %1580 = vmatprep.mubr.msk.f32.mxu1 %vm2002_vm0, %v2003_v5  ;;  %1882 = vmatpush3.bf16.msra.mxu1 %v1881_v44  ;;  %v1872_v20 = vpack.c.bf16 %v1304_v17, %v1303_v16  ;;  %v1323_v23 = vld [vmem:[%s2683_s1 + $0x100] sm:$0xff]  ;;  %v1324_v24 = vld [vmem:[%s2683_s1 + $0x108] sm:$0xff]  ;;  %v1325_v28 = vld [vmem:[%s2683_s1 + $0x110] sm:$0xff] }
  0x22   :  { %642 = vrot.lane.b32.xlu0 %v2142_v29, %s2004_s20  ;;  %644 = vrot.lane.b32.xlu1 %v2169_v36, %s2004_s20  ;;  %v1887_v27 = vpack.c.bf16 %v1324_v24, %v1323_v23  ;;  %v1327_v33 = vld [vmem:[%s2683_s1 + $0x120] sm:$0xff]  ;;  %v1328_v34 = vld [vmem:[%s2683_s1 + $0x128] sm:$0xff] }
  0x23   :  { %1883 = vmatprep.subr.bf16.mxu1 %v2001_v4  ;;  %v1362_v37 = vld [vmem:[%s2683_s1 + $0x1c0] sm:$0xff]  ;;  %v1363_v38 = vld [vmem:[%s2683_s1 + $0x1c8] sm:$0xff]  ;;  %v1893_v39 = vpack.c.bf16 %v1328_v34, %v1327_v33  ;;  %v1330_v41 = vld [vmem:[%s2683_s1 + $0x138] sm:$0xff] }
  0x24   :  { %1581 = vmatmul.mubr.msk.f32.gmra.mrb[6].mxu1 %vm58_vm1, %v2058_v3  ;;  %v1863_v3 = vpack.c.bf16 %v1298_v2, %v1297_v1  ;;  %v1923_v44 = vpack.c.bf16 %v1363_v38, %v1362_v37  ;;  %v1364_v46 = vld [vmem:[%s2683_s1 + $0x1d0] sm:$0xff]  ;;  %v1349_v53 = vld [vmem:[%s2683_s1 + $0x180] sm:$0xff]  ;;  %v1350_v54 = vld [vmem:[%s2683_s1 + $0x188] sm:$0xff] }
  0x25   :  { %1583 = vmatprep.mubr.msk.f32.mxu1 %vm2002_vm0, %v2003_v5  ;;  %1885 = vmatpush3.bf16.msra.mxu1 %v1884_v47  ;;  %v1365_v47 = vld [vmem:[%s2683_s1 + $0x1d8] sm:$0xff]  ;;  %v1366_v57 = vld [vmem:[%s2683_s1 + $0x1e0] sm:$0xff]  ;;  %v1367_v58 = vld [vmem:[%s2683_s1 + $0x1e8] sm:$0xff] }
  0x26   :  { %646 = vrot.lane.b32.xlu0 %v2164_v35, %s2004_s20  ;;  %648 = vrot.lane.b32.xlu1 %v2186_v40, %s2004_s20  ;;  %v1351_v61 = vld [vmem:[%s2683_s1 + $0x190] sm:$0xff]  ;;  %v1352_v62 = vld [vmem:[%s2683_s1 + $0x198] sm:$0xff] }
  0x27   :  { %1898 = vmatprep.subr.bf16.mxu1 %v2001_v4  ;;  %v1368_v1 = vld [vmem:[%s2683_s1 + $0x1f0] sm:$0xff]  ;;  %v1369_v2 = vld [vmem:[%s2683_s1 + $0x1f8] sm:$0xff]  ;;  %v1375_v17 = vld [vmem:[%s2683_s1 + $0x200] sm:$0xff] }
  0x28   :  { %1584 = vmatmul.mubr.msk.f32.gmra.mrb[8].mxu1 %vm58_vm1, %v2073_v6  ;;  %v1299_v6 = vld [vmem:[%s2683_s1 + $0x90] sm:$0xff]  ;;  %v1379_v24 = vld [vmem:[%s2683_s1 + $0x220] sm:$0xff] }
  0x29   :  { %1633 = vmatprep.mubr.msk.f32.mxu1 %vm2002_vm0, %v2003_v5  ;;  %v1866_v10 = vpack.c.bf16 %v1300_v7, %v1299_v6  ;;  %v1914_v6 = vpack.c.bf16 %v1352_v62, %v1351_v61  ;;  %v1176_v61 = vld [vmem:[%s2685_s3 + $0x28] sm:$0xff] }
  0x2a   :  { %888 = vrot.lane.b32.xlu0 %v2230_v48, %s2000_s22  ;;  %1012 = vrot.lane.b32.xlu1 %v2230_v48, %s2004_s20 }
  0x2c   :  { %1634 = vmatmul.mubr.msk.f32.vlgmr.msra.gmra.mrb[10].mxu1 %vm58_vm1, %v2147_v30 }
  0x2d   :  { %1636 = vmatprep.mubr.msk.f32.mxu1 %vm2002_vm0, %v2003_v5  ;;  %1900 = vmatpush3.bf16.msra.mxu1 %v1899_v52  ;;  %v1926_v52 = vpack.c.bf16 %v1365_v47, %v1364_v46 }
  0x2e   :  { %890 = vrot.lane.b32.xlu0 %v2250_v51, %s2000_s22  ;;  %1014 = vrot.lane.b32.xlu1 %v2250_v51, %s2004_s20 }
  0x2f   :  { %1901 = vmatprep.subr.bf16.mxu1 %v2001_v4 }
  0x30   :  { %1637 = vmatmul.mubr.msk.f32.gmra.mrb[12].mxu1 %vm58_vm1, %v2142_v29  ;;  %v1326_v29 = vld [vmem:[%s2683_s1 + $0x118] sm:$0xff] }
  0x31   :  { %1639 = vmatprep.mubr.msk.f32.mxu1 %vm2002_vm0, %v2003_v5  ;;  %1903 = vmatpush3.bf16.msra.mxu1 %v1902_v56  ;;  %v1890_v32 = vpack.c.bf16 %v1326_v29, %v1325_v28  ;;  %v1382_v28 = vld [vmem:[%s2683_s1 + $0x238] sm:$0xff] }
  0x32   :  { %892 = vrot.lane.b32.xlu0 %v2269_v55, %s2000_s22  ;;  %1016 = vrot.lane.b32.xlu1 %v2269_v55, %s2004_s20 }
  0x33   :  { %1904 = vmatprep.subr.bf16.mxu1 %v2001_v4 }
  0x34   :  { %1640 = vmatmul.mubr.msk.f32.gmra.mrb[14].mxu1 %vm58_vm1, %v2169_v36 }
  0x35   :  { %1642 = vmatprep.mubr.msk.f32.mxu1 %vm2002_vm0, %v2003_v5  ;;  %1906 = vmatpush3.bf16.msra.mxu1 %v1905_v60  ;;  %v1911_v60 = vpack.c.bf16 %v1350_v54, %v1349_v53  ;;  %v1172_v53 = vld [vmem:[%s2685_s3 + $0x8] sm:$0xff] }
  0x36   :  { %894 = vrot.lane.b32.xlu0 %v2289_v59, %s2000_s22  ;;  %1018 = vrot.lane.b32.xlu1 %v2289_v59, %s2004_s20 }
  0x37   :  { %1907 = vmatprep.subr.bf16.mxu1 %v2001_v4 }
  0x38   :  { %1643 = vmatmul.mubr.msk.f32.gmra.mrb[16].mxu1 %vm58_vm1, %v2164_v35 }
  0x39   :  { %1645 = vmatprep.mubr.msk.f32.mxu1 %vm2002_vm0, %v2003_v5  ;;  %1909 = vmatpush3.bf16.msra.mxu1 %v1908_v0  ;;  %v1929_v0 = vpack.c.bf16 %v1367_v58, %v1366_v57  ;;  %v1174_v57 = vld [vmem:[%s2685_s3 + $0x18] sm:$0xff] }
  0x3a   :  { %896 = vrot.lane.b32.xlu0 %v2309_v63, %s2000_s22  ;;  %1020 = vrot.lane.b32.xlu1 %v2309_v63, %s2004_s20 }
  0x3b   :  { %1922 = vmatprep.subr.bf16.mxu1 %v2001_v4 }
  0x3c   :  { %1646 = vmatmul.mubr.msk.f32.gmra.mrb[18].mxu1 %vm58_vm1, %v2186_v40  ;;  %v1329_v40 = vld [vmem:[%s2683_s1 + $0x130] sm:$0xff] }
  0x3d   :  { %1695 = vmatprep.mubr.msk.f32.mxu1 %vm2002_vm0, %v2003_v5  ;;  %v1896_v45 = vpack.c.bf16 %v1330_v41, %v1329_v40 }
  0x74   :  { %v49_v8 = vpop.permute.xlu0 %48  ;;  %v53_v9 = vpop.permute.xlu1 %52 }
  0x75   :  { %1541 = vmatmul.mubr.msk.f32.vlgmr.msra.gmra.mrb[0].mxu0 %vm58_vm1, %v49_v8  ;;  %v1353_v8 = vld [vmem:[%s2683_s1 + $0x1a0] sm:$0xff] }
  0x76   :  { %1864 = vmatpush3.bf16.msra.mxu0 %v1863_v3  ;;  %1543 = vmatprep.mubr.msk.f32.mxu0 %vm2002_vm0, %v2003_v5 }
  0x77   :  { %1865 = vmatprep.subr.bf16.mxu0 %v2001_v4 }
  0x78   :  { %v51_v13 = vpop.permute.xlu0 %50  ;;  %v55_v14 = vpop.permute.xlu1 %54 }
  0x79   :  { %1544 = vmatmul.mubr.msk.f32.gmra.mrb[2].mxu0 %vm58_vm1, %v51_v13  ;;  %v1355_v13 = vld [vmem:[%s2683_s1 + $0x1b0] sm:$0xff] }
  0x7a   :  { %1867 = vmatpush3.bf16.msra.mxu0 %v1866_v10  ;;  %1546 = vmatprep.mubr.msk.f32.mxu0 %vm2002_vm0, %v2003_v5  ;;  %v1932_v10 = vpack.c.bf16 %v1369_v2, %v1368_v1  ;;  %v1178_v1 = vld [vmem:[%s2685_s3 + $0x38] sm:$0xff] }
  0x7b   :  { %1868 = vmatprep.subr.bf16.mxu0 %v2001_v4 }
  0x7c   :  { %v57_v18 = vpop.permute.xlu0 %56  ;;  %v269_v19 = vpop.permute.xlu1 %268 }
  0x7d   :  { %1547 = vmatmul.mubr.msk.f32.gmra.mrb[4].mxu0 %vm58_vm1, %v53_v9  ;;  %v1354_v9 = vld [vmem:[%s2683_s1 + $0x1a8] sm:$0xff] }
  0x7e   :  { %1870 = vmatpush3.bf16.msra.mxu0 %v1869_v15  ;;  %1549 = vmatprep.mubr.msk.f32.mxu0 %vm2002_vm0, %v2003_v5  ;;  %v1917_v11 = vpack.c.bf16 %v1354_v9, %v1353_v8  ;;  %v1181_v8 = vld [vmem:[%s2685_s3 + $0x50] sm:$0xff]  ;;  %v1182_v9 = vld [vmem:[%s2685_s3 + $0x58] sm:$0xff] }
  0x7f   :  { %1871 = vmatprep.subr.bf16.mxu0 %v2001_v4 }
  0x80   :  { %v271_v21 = vpop.permute.xlu0 %270  ;;  %v273_v22 = vpop.permute.xlu1 %272 }
  0x81   :  { %1550 = vmatmul.mubr.msk.f32.gmra.mrb[6].mxu0 %vm58_vm1, %v55_v14  ;;  %v1356_v14 = vld [vmem:[%s2683_s1 + $0x1b8] sm:$0xff] }
  0x82   :  { %1552 = vmatprep.mubr.msk.f32.mxu0 %vm2002_vm0, %v2003_v5  ;;  %1873 = vmatpush3.bf16.msra.mxu0 %v1872_v20  ;;  %v1920_v15 = vpack.c.bf16 %v1356_v14, %v1355_v13  ;;  %v1185_v14 = vld [vmem:[%s2685_s3 + $0x70] sm:$0xff] }
  0x83   :  { %1886 = vmatprep.subr.bf16.mxu0 %v2001_v4 }
  0x84   :  { %v277_v25 = vpop.permute.xlu1 %276  ;;  %v275_v26 = vpop.permute.xlu0 %274 }
  0x85   :  { %1553 = vmatmul.mubr.msk.f32.gmra.mrb[8].mxu0 %vm58_vm1, %v57_v18  ;;  %v1376_v18 = vld [vmem:[%s2683_s1 + $0x208] sm:$0xff] }
  0x86   :  { %1602 = vmatprep.mubr.msk.f32.mxu0 %vm2002_vm0, %v2003_v5 }
  0x88   :  { %v2384_v30 = vpop.permute.xlu1 %518  ;;  %v517_v31 = vpop.permute.xlu0 %516 }
  0x89   :  { %1603 = vmatmul.mubr.msk.f32.vlgmr.msra.gmra.mrb[10].mxu0 %vm58_vm1, %v269_v19  ;;  %v1935_v19 = vpack.c.bf16 %v1376_v18, %v1375_v17 }
  0x8a   :  { %1888 = vmatpush3.bf16.msra.mxu0 %v1887_v27  ;;  %1605 = vmatprep.mubr.msk.f32.mxu0 %vm2002_vm0, %v2003_v5  ;;  %v1381_v27 = vld [vmem:[%s2683_s1 + $0x230] sm:$0xff] }
  0x8b   :  { %1889 = vmatprep.subr.bf16.mxu0 %v2001_v4 }
  0x8c   :  { %v2396_v35 = vpop.permute.xlu1 %522  ;;  %v2398_v36 = vpop.permute.xlu0 %520 }
  0x8d   :  { %1606 = vmatmul.mubr.msk.f32.gmra.mrb[12].mxu0 %vm58_vm1, %v271_v21  ;;  %v1377_v21 = vld [vmem:[%s2683_s1 + $0x210] sm:$0xff] }
  0x8e   :  { %1891 = vmatpush3.bf16.msra.mxu0 %v1890_v32  ;;  %1608 = vmatprep.mubr.msk.f32.mxu0 %vm2002_vm0, %v2003_v5 }
  0x8f   :  { %1892 = vmatprep.subr.bf16.mxu0 %v2001_v4 }
  0x90   :  { %v641_v42 = vpop.permute.xlu1 %640  ;;  %v2416_v43 = vpop.permute.xlu0 %524 }
  0x91   :  { %1609 = vmatmul.mubr.msk.f32.gmra.mrb[14].mxu0 %vm58_vm1, %v273_v22  ;;  %1696 = vmatmul.mubr.msk.f32.vlgmr.msra.gmra.mrb[20].mxu1 %vm58_vm1, %v641_v42  ;;  %v1378_v22 = vld [vmem:[%s2683_s1 + $0x218] sm:$0xff] }
  0x92   :  { %1894 = vmatpush3.bf16.msra.mxu0 %v1893_v39  ;;  %1611 = vmatprep.mubr.msk.f32.mxu0 %vm2002_vm0, %v2003_v5  ;;  %v1938_v23 = vpack.c.bf16 %v1378_v22, %v1377_v21 }
  0x93   :  { %1895 = vmatprep.subr.bf16.mxu0 %v2001_v4  ;;  %1698 = vmatprep.mubr.msk.f32.mxu1 %vm2002_vm0, %v2003_v5 }
  0x94   :  { %v643_v49 = vpop.permute.xlu0 %642  ;;  %1924 = vmatpush3.bf16.msra.mxu1 %v1923_v44  ;;  %v645_v50 = vpop.permute.xlu1 %644 }
  0x95   :  { %1612 = vmatmul.mubr.msk.f32.gmra.mrb[16].mxu0 %vm58_vm1, %v275_v26  ;;  %1699 = vmatmul.mubr.msk.f32.gmra.mrb[22].mxu1 %vm58_vm1, %v643_v49 }
  0x96   :  { %1614 = vmatprep.mubr.msk.f32.mxu0 %vm2002_vm0, %v2003_v5  ;;  %1897 = vmatpush3.bf16.msra.mxu0 %v1896_v45 }
  0x97   :  { %1910 = vmatprep.subr.bf16.mxu0 %v2001_v4  ;;  %1701 = vmatprep.mubr.msk.f32.mxu1 %vm2002_vm0, %v2003_v5 }
  0x98   :  { %1925 = vmatprep.subr.bf16.mxu1 %v2001_v4  ;;  %v647_v56 = vpop.permute.xlu0 %646  ;;  %v649_v7 = vpop.permute.xlu1 %648 }
  0x99   :  { %1615 = vmatmul.mubr.msk.f32.gmra.mrb[18].mxu0 %vm58_vm1, %v277_v25  ;;  %1702 = vmatmul.mubr.msk.f32.gmra.mrb[24].mxu1 %vm58_vm1, %v645_v50  ;;  %v1380_v25 = vld [vmem:[%s2683_s1 + $0x228] sm:$0xff] }
  0x9a   :  { %1664 = vmatprep.mubr.msk.f32.mxu0 %vm2002_vm0, %v2003_v5  ;;  %1927 = vmatpush3.bf16.msra.mxu1 %v1926_v52  ;;  %v1171_v52 = vld [vmem:[%s2685_s3] sm:$0xff] }
  0x9b   :  { %1704 = vmatprep.mubr.msk.f32.mxu1 %vm2002_vm0, %v2003_v5  ;;  %1928 = vmatprep.subr.bf16.mxu1 %v2001_v4  ;;  %v1947_v54 = vpack.c.bf16 %v1172_v53, %v1171_v52 }
  0x9c   :  { %v889_v3 = vpop.permute.xlu0 %888  ;;  %v1013_v29 = vpop.permute.xlu1 %1012 }
  0x9d   :  { %1665 = vmatmul.mubr.msk.f32.vlgmr.msra.gmra.mrb[20].mxu0 %vm58_vm1, %v517_v31  ;;  %1705 = vmatmul.mubr.msk.f32.gmra.mrb[26].mxu1 %vm58_vm1, %v647_v56  ;;  %v1173_v56 = vld [vmem:[%s2685_s3 + $0x10] sm:$0xff] }
  0x9e   :  { %1912 = vmatpush3.bf16.msra.mxu0 %v1911_v60  ;;  %1667 = vmatprep.mubr.msk.f32.mxu0 %vm2002_vm0, %v2003_v5  ;;  %v1950_v58 = vpack.c.bf16 %v1174_v57, %v1173_v56  ;;  %v1175_v60 = vld [vmem:[%s2685_s3 + $0x20] sm:$0xff] }
  0x9f   :  { %1913 = vmatprep.subr.bf16.mxu0 %v2001_v4  ;;  %1930 = vmatpush3.bf16.msra.mxu1 %v1929_v0  ;;  %v1953_v62 = vpack.c.bf16 %v1176_v61, %v1175_v60  ;;  %v1177_v0 = vld [vmem:[%s2685_s3 + $0x30] sm:$0xff] }
  0xa0   :  { %1707 = vmatprep.mubr.msk.f32.mxu1 %vm2002_vm0, %v2003_v5  ;;  %1931 = vmatprep.subr.bf16.mxu1 %v2001_v4  ;;  %v891_v12 = vpop.permute.xlu0 %890  ;;  %v1956_v2 = vpack.c.bf16 %v1178_v1, %v1177_v0 }
  0xa1   :  { %1668 = vmatmul.mubr.msk.f32.gmra.mrb[22].mxu0 %vm58_vm1, %v2384_v30  ;;  %1708 = vmatmul.mubr.msk.f32.gmra.mrb[28].mxu1 %vm58_vm1, %v649_v7  ;;  %v1015_v30 = vpop.permute.xlu1 %1014 }
  0xa2   :  { %1915 = vmatpush3.bf16.msra.mxu0 %v1914_v6  ;;  %1670 = vmatprep.mubr.msk.f32.mxu0 %vm2002_vm0, %v2003_v5  ;;  %v1180_v6 = vld [vmem:[%s2685_s3 + $0x48] sm:$0xff] }
  0xa3   :  { %1916 = vmatprep.subr.bf16.mxu0 %v2001_v4  ;;  %1933 = vmatpush3.bf16.msra.mxu1 %v1932_v10  ;;  %v1962_v10 = vpack.c.bf16 %v1182_v9, %v1181_v8 }
  0xa4   :  { %1757 = vmatprep.mubr.msk.f32.mxu1 %vm2002_vm0, %v2003_v5  ;;  %1946 = vmatprep.subr.bf16.mxu1 %v2001_v4  ;;  %v893_v16 = vpop.permute.xlu0 %892 }
  0xa5   :  { %1671 = vmatmul.mubr.msk.f32.gmra.mrb[24].mxu0 %vm58_vm1, %v2398_v36 }
  0xa6   :  { %1918 = vmatpush3.bf16.msra.mxu0 %v1917_v11  ;;  %1673 = vmatprep.mubr.msk.f32.mxu0 %vm2002_vm0, %v2003_v5  ;;  %v1183_v11 = vld [vmem:[%s2685_s3 + $0x60] sm:$0xff] }
  0xa7   :  { %1919 = vmatprep.subr.bf16.mxu0 %v2001_v4  ;;  %1758 = vmatmul.mubr.msk.f32.vlgmr.msra.gmra.mrb[30].mxu1 %vm58_vm1, %v889_v3  ;;  %v1179_v3 = vld [vmem:[%s2685_s3 + $0x40] sm:$0xff] }
  0xa8   :  { %1760 = vmatprep.mubr.msk.f32.mxu1 %vm2002_vm0, %v2003_v5  ;;  %v895_v20 = vpop.permute.xlu0 %894  ;;  %1948 = vmatpush3.bf16.msra.mxu1 %v1947_v54  ;;  %v1959_v7 = vpack.c.bf16 %v1180_v6, %v1179_v3 }
  0xa9   :  { %1674 = vmatmul.mubr.msk.f32.gmra.mrb[26].mxu0 %vm58_vm1, %v2396_v35  ;;  %1949 = vmatprep.subr.bf16.mxu1 %v2001_v4 }
  0xaa   :  { %1676 = vmatprep.mubr.msk.f32.mxu0 %vm2002_vm0, %v2003_v5  ;;  %1921 = vmatpush3.bf16.msra.mxu0 %v1920_v15  ;;  %v1186_v15 = vld [vmem:[%s2685_s3 + $0x78] sm:$0xff] }
  0xab   :  { %1934 = vmatprep.subr.bf16.mxu0 %v2001_v4  ;;  %1761 = vmatmul.mubr.msk.f32.gmra.mrb[32].mxu1 %vm58_vm1, %v891_v12  ;;  %v1184_v12 = vld [vmem:[%s2685_s3 + $0x68] sm:$0xff] }
  0xac   :  { %1763 = vmatprep.mubr.msk.f32.mxu1 %vm2002_vm0, %v2003_v5  ;;  %v897_v26 = vpop.permute.xlu0 %896  ;;  %1951 = vmatpush3.bf16.msra.mxu1 %v1950_v58  ;;  %v1965_v13 = vpack.c.bf16 %v1184_v12, %v1183_v11 }
  0xad   :  { %1677 = vmatmul.mubr.msk.f32.gmra.mrb[28].mxu0 %vm58_vm1, %v2416_v43  ;;  %1952 = vmatprep.subr.bf16.mxu1 %v2001_v4 }
  0xae   :  { %1726 = vmatprep.mubr.msk.f32.mxu0 %vm2002_vm0, %v2003_v5 }
  0xaf   :  { %1764 = vmatmul.mubr.msk.f32.gmra.mrb[34].mxu1 %vm58_vm1, %v893_v16  ;;  %v1968_v16 = vpack.c.bf16 %v1186_v15, %v1185_v14 }
  0xb0   :  { %1766 = vmatprep.mubr.msk.f32.mxu1 %vm2002_vm0, %v2003_v5  ;;  %1954 = vmatpush3.bf16.msra.mxu1 %v1953_v62 }
  0xb1   :  { %1727 = vmatmul.mubr.msk.f32.vlgmr.msra.gmra.mrb[30].mxu0 %vm58_vm1, %v2230_v48  ;;  %v1941_v48 = vpack.c.bf16 %v1380_v25, %v1379_v24  ;;  %1955 = vmatprep.subr.bf16.mxu1 %v2001_v4 }
  0xb2   :  { %1936 = vmatpush3.bf16.msra.mxu0 %v1935_v19  ;;  %1729 = vmatprep.mubr.msk.f32.mxu0 %vm2002_vm0, %v2003_v5 }
  0xb3   :  { %1937 = vmatprep.subr.bf16.mxu0 %v2001_v4  ;;  %1767 = vmatmul.mubr.msk.f32.gmra.mrb[36].mxu1 %vm58_vm1, %v895_v20 }
  0xb4   :  { %1769 = vmatprep.mubr.msk.f32.mxu1 %vm2002_vm0, %v2003_v5  ;;  %1957 = vmatpush3.bf16.msra.mxu1 %v1956_v2 }
  0xb5   :  { %1730 = vmatmul.mubr.msk.f32.gmra.mrb[32].mxu0 %vm58_vm1, %v2250_v51  ;;  %v1944_v51 = vpack.c.bf16 %v1382_v28, %v1381_v27  ;;  %1958 = vmatprep.subr.bf16.mxu1 %v2001_v4 }
  0xb6   :  { %1939 = vmatpush3.bf16.msra.mxu0 %v1938_v23  ;;  %1732 = vmatprep.mubr.msk.f32.mxu0 %vm2002_vm0, %v2003_v5 }
  0xb7   :  { %1940 = vmatprep.subr.bf16.mxu0 %v2001_v4  ;;  %1770 = vmatmul.mubr.msk.f32.gmra.mrb[38].mxu1 %vm58_vm1, %v897_v26 }
  0xb8   :  { %1835 = vmatprep.mubr.msk.f32.mxu1 %vm2002_vm0, %v2003_v5  ;;  %1960 = vmatpush3.bf16.msra.mxu1 %v1959_v7 }
  0xb9   :  { %1733 = vmatmul.mubr.msk.f32.gmra.mrb[34].mxu0 %vm58_vm1, %v2269_v55  ;;  %v1017_v55 = vpop.permute.xlu1 %1016  ;;  %1961 = vmatprep.subr.bf16.mxu1 %v2001_v4 }
  0xba   :  { %1942 = vmatpush3.bf16.msra.mxu0 %v1941_v48  ;;  %1735 = vmatprep.mubr.msk.f32.mxu0 %vm2002_vm0, %v2003_v5 }
  0xbb   :  { %1943 = vmatprep.subr.bf16.mxu0 %v2001_v4 }
  0xbc   :  { %1963 = vmatpush3.bf16.msra.mxu1 %v1962_v10 }
  0xbd   :  { %1736 = vmatmul.mubr.msk.f32.gmra.mrb[36].mxu0 %vm58_vm1, %v2289_v59  ;;  %v1019_v59 = vpop.permute.xlu1 %1018  ;;  %1964 = vmatprep.subr.bf16.mxu1 %v2001_v4 }
  0xbe   :  { %1738 = vmatprep.mubr.msk.f32.mxu0 %vm2002_vm0, %v2003_v5  ;;  %1945 = vmatpush3.bf16.msra.mxu0 %v1944_v51 }
  0xc0   :  { %1966 = vmatpush3.bf16.msra.mxu1 %v1965_v13 }
  0xc1   :  { %1739 = vmatmul.mubr.msk.f32.gmra.mrb[38].mxu0 %vm58_vm1, %v2309_v63  ;;  %v1021_v63 = vpop.permute.xlu1 %1020  ;;  %1967 = vmatprep.subr.bf16.mxu1 %v2001_v4 }
  0xc2   :  { %1788 = vmatprep.mubr.msk.f32.mxu0 %vm2002_vm0, %v2003_v5 }
  0xc4   :  { %1969 = vmatpush3.bf16.msra.mxu1 %v1968_v16 }
  0xc5   :  { %1789 = vmatmul.mubr.msk.f32.vlgmr.msra.gmra.mrb[40].mxu0 %vm58_vm1, %v1013_v29 }
  0xc6   :  { %1791 = vmatprep.mubr.msk.f32.mxu0 %vm2002_vm0, %v2003_v5 }
  0xc9   :  { %1792 = vmatmul.mubr.msk.f32.gmra.mrb[42].mxu0 %vm58_vm1, %v1015_v30 }
  0xca   :  { %1794 = vmatprep.mubr.msk.f32.mxu0 %vm2002_vm0, %v2003_v5 }
  0xcd   :  { %1795 = vmatmul.mubr.msk.f32.gmra.mrb[44].mxu0 %vm58_vm1, %v1017_v55 }
  0xce   :  { %1797 = vmatprep.mubr.msk.f32.mxu0 %vm2002_vm0, %v2003_v5 }
  0xd1   :  { %1798 = vmatmul.mubr.msk.f32.gmra.mrb[46].mxu0 %vm58_vm1, %v1019_v59 }
  0xd2   :  { %1800 = vmatprep.mubr.msk.f32.mxu0 %vm2002_vm0, %v2003_v5 }
  0xd5   :  { %1801 = vmatmul.mubr.msk.f32.gmra.mrb[48].mxu0 %vm58_vm1, %v1021_v63 }
  0xeb   :  { %v235_v31 = vpop.f32.mrb[0].mxu1 }
  0xec   :  { %v1573_v32 = vpop.f32.mrb[1].mxu1 }
  0xef   :  { %v240_v33 = vpop.f32.mrb[2].mxu1 }
  0xf0   :  { %v1576_v34 = vpop.f32.mrb[3].mxu1 }
  0xf3   :  { %v245_v35 = vpop.f32.mrb[4].mxu1 }
  0xf4   :  { %v1579_v36 = vpop.f32.mrb[5].mxu1 }
  0xf7   :  { %v2588_v37 = vpop.f32.mrb[6].mxu1 }
  0xf8   :  { %v1582_v38 = vpop.f32.mrb[7].mxu1 }
  0xfb   :  { %v2590_v39 = vpop.f32.mrb[8].mxu1 }
  0xfc   :  { %v1585_v40 = vpop.f32.mrb[9].mxu1 }
  0xff   :  { %v2592_v41 = vpop.f32.mrb[10].mxu1 }
 0x100   :  { %v1635_v42 = vpop.f32.mrb[11].mxu1 }
 0x103   :  { %v2594_v43 = vpop.f32.mrb[12].mxu1 }
 0x104   :  { %v1638_v5 = vpop.f32.mrb[13].mxu1 }
 0x107   :  { %v2596_v44 = vpop.f32.mrb[14].mxu1 }
 0x108   :  { %v1641_v45 = vpop.f32.mrb[15].mxu1 }
 0x10b   :  { %v2598_v46 = vpop.f32.mrb[16].mxu1 }
 0x10c   :  { %v1644_v47 = vpop.f32.mrb[17].mxu1 }
 0x10f   :  { %v2600_v49 = vpop.f32.mrb[18].mxu1 }
 0x110   :  { %v1647_v50 = vpop.f32.mrb[19].mxu1 }
 0x148   :  { %v135_v17 = vpop.f32.mrb[0].mxu0 }
 0x149   :  { %v236_v18 = vadd.f32 %v235_v31, %v135_v17  ;;  %v1542_v19 = vpop.f32.mrb[1].mxu0 }
 0x14c   :  { %v140_v20 = vpop.f32.mrb[2].mxu0 }
 0x14d   :  { %v241_v21 = vadd.f32 %v240_v33, %v140_v20  ;;  %v1545_v22 = vpop.f32.mrb[3].mxu0 }
 0x150   :  { %v145_v23 = vpop.f32.mrb[4].mxu0 }
 0x151   :  { %v246_v24 = vadd.f32 %v245_v35, %v145_v23  ;;  %v1548_v25 = vpop.f32.mrb[5].mxu0 }
 0x154   :  { %v150_v26 = vpop.f32.mrb[6].mxu0 }
 0x155   :  { %v251_v48 = vadd.f32 %v2588_v37, %v150_v26  ;;  %v1551_v27 = vpop.f32.mrb[7].mxu0 }
 0x158   :  { %v155_v28 = vpop.f32.mrb[8].mxu0 }
 0x159   :  { %v256_v51 = vadd.f32 %v2590_v39, %v155_v28  ;;  %v1554_v29 = vpop.f32.mrb[9].mxu0 }
 0x15c   :  { %v354_v30 = vpop.f32.mrb[10].mxu0 }
 0x15d   :  { %v378_v4 = vadd.f32 %v354_v30, %v236_v18  ;;  %v1604_v55 = vpop.f32.mrb[11].mxu0 }
 0x15f   :  { %v502_v59 = vadd.f32 %v2592_v41, %v378_v4 }
 0x160   :  { %v359_v63 = vpop.f32.mrb[12].mxu0 }
 0x161   :  { %v379_v31 = vadd.f32 %v359_v63, %v241_v21  ;;  %v1607_v32 = vpop.f32.mrb[13].mxu0 }
 0x163   :  { %v503_v33 = vadd.f32 %v2594_v43, %v379_v31 }
 0x164   :  { %v364_v34 = vpop.f32.mrb[14].mxu0  ;;  %v726_v35 = vpop.f32.mrb[20].mxu1 }
 0x165   :  { %v380_v36 = vadd.f32 %v364_v34, %v246_v24  ;;  %v1610_v38 = vpop.f32.mrb[15].mxu0  ;;  %v1697_v37 = vpop.f32.mrb[21].mxu1 }
 0x167   :  { %v504_v40 = vadd.f32 %v2596_v44, %v380_v36 }
 0x168   :  { %v369_v42 = vpop.f32.mrb[16].mxu0  ;;  %v731_v39 = vpop.f32.mrb[22].mxu1 }
 0x169   :  { %v381_v5 = vadd.f32 %v369_v42, %v251_v48  ;;  %v1613_v45 = vpop.f32.mrb[17].mxu0  ;;  %v1700_v47 = vpop.f32.mrb[23].mxu1 }
 0x16b   :  { %v505_v50 = vadd.f32 %v2598_v46, %v381_v5 }
 0x16c   :  { %v374_v41 = vpop.f32.mrb[18].mxu0  ;;  %v736_v52 = vpop.f32.mrb[24].mxu1 }
 0x16d   :  { %v382_v53 = vadd.f32 %v374_v41, %v256_v51  ;;  %v1616_v54 = vpop.f32.mrb[19].mxu0  ;;  %v1703_v56 = vpop.f32.mrb[25].mxu1 }
 0x16f   :  { %v506_v43 = vadd.f32 %v2600_v49, %v382_v53 }
 0x170   :  { %v602_v57 = vpop.f32.mrb[20].mxu0  ;;  %v741_v58 = vpop.f32.mrb[26].mxu1 }
 0x171   :  { %v626_v60 = vadd.f32 %v602_v57, %v502_v59  ;;  %v1666_v61 = vpop.f32.mrb[21].mxu0  ;;  %v1706_v62 = vpop.f32.mrb[27].mxu1 }
 0x173   :  { %v750_v44 = vadd.f32 %v726_v35, %v626_v60 }
 0x174   :  { %v607_v0 = vpop.f32.mrb[22].mxu0  ;;  %v746_v1 = vpop.f32.mrb[28].mxu1 }
 0x175   :  { %v627_v2 = vadd.f32 %v607_v0, %v503_v33  ;;  %v1669_v3 = vpop.f32.mrb[23].mxu0  ;;  %v1709_v6 = vpop.f32.mrb[29].mxu1 }
 0x177   :  { %v751_v7 = vadd.f32 %v731_v39, %v627_v2 }
 0x178   :  { %v612_v46 = vpop.f32.mrb[24].mxu0 }
 0x179   :  { %v628_v8 = vadd.f32 %v612_v46, %v504_v40  ;;  %v1672_v9 = vpop.f32.mrb[25].mxu0 }
 0x17a   :  { %v974_v10 = vpop.f32.mrb[30].mxu1 }
 0x17b   :  { %v752_v11 = vadd.f32 %v736_v52, %v628_v8  ;;  %v1759_v12 = vpop.f32.mrb[31].mxu1 }
 0x17c   :  { %v617_v13 = vpop.f32.mrb[26].mxu0 }
 0x17d   :  { %v629_v49 = vadd.f32 %v617_v13, %v505_v50  ;;  %v1675_v14 = vpop.f32.mrb[27].mxu0  ;;  %v1388_v50 = vld [vmem:[%s2684_s2] ss:$0 sm:$0xff] }
 0x17e   :  { %v979_v15 = vpop.f32.mrb[32].mxu1 }
 0x17f   :  { %v753_v16 = vadd.f32 %v741_v58, %v629_v49  ;;  %v1762_v17 = vpop.f32.mrb[33].mxu1 }
 0x180   :  { %v622_v18 = vpop.f32.mrb[28].mxu0 }
 0x181   :  { %v630_v19 = vadd.f32 %v622_v18, %v506_v43  ;;  %v1678_v20 = vpop.f32.mrb[29].mxu0 }
 0x182   :  { %v984_v21 = vpop.f32.mrb[34].mxu1 }
 0x183   :  { %v754_v22 = vadd.f32 %v746_v1, %v630_v19  ;;  %v1765_v23 = vpop.f32.mrb[35].mxu1 }
 0x184   :  { %v850_v24 = vpop.f32.mrb[30].mxu0 }
 0x185   :  { %v874_v25 = vadd.f32 %v850_v24, %v750_v44  ;;  %v1728_v26 = vpop.f32.mrb[31].mxu0 }
 0x186   :  { %v989_v48 = vpop.f32.mrb[36].mxu1 }
 0x187   :  { %v998_v27 = vadd.f32 %v974_v10, %v874_v25  ;;  %v1768_v28 = vpop.f32.mrb[37].mxu1 }
 0x188   :  { %v855_v51 = vpop.f32.mrb[32].mxu0 }
 0x189   :  { %v875_v29 = vadd.f32 %v855_v51, %v751_v7  ;;  %v1731_v30 = vpop.f32.mrb[33].mxu0  ;;  %v1389_v51 = vld [vmem:[%s2686_s4] ss:$0 sm:$0xff] }
 0x18a   :  { %v994_v4 = vpop.f32.mrb[38].mxu1 }
 0x18b   :  { %v999_v55 = vadd.f32 %v979_v15, %v875_v29  ;;  %v1771_v59 = vpop.f32.mrb[39].mxu1 }
 0x18c   :  { %v860_v63 = vpop.f32.mrb[34].mxu0 }
 0x18d   :  { %v876_v31 = vadd.f32 %v860_v63, %v752_v11  ;;  %v1734_v32 = vpop.f32.mrb[35].mxu0 }
 0x18f   :  { %v1000_v33 = vadd.f32 %v984_v21, %v876_v31 }
 0x190   :  { %v865_v34 = vpop.f32.mrb[36].mxu0 }
 0x191   :  { %v877_v35 = vadd.f32 %v865_v34, %v753_v16  ;;  %v1737_v36 = vpop.f32.mrb[37].mxu0 }
 0x193   :  { %v1001_v38 = vadd.f32 %v989_v48, %v877_v35 }
 0x194   :  { %v870_v37 = vpop.f32.mrb[38].mxu0 }
 0x195   :  { %v878_v40 = vadd.f32 %v870_v37, %v754_v22  ;;  %v1740_v42 = vpop.f32.mrb[39].mxu0 }
 0x197   :  { %v1002_v39 = vadd.f32 %v994_v4, %v878_v40 }
 0x198   :  { %v1098_v5 = vpop.f32.mrb[40].mxu0 }
 0x199   :  { %v1122_v45 = vadd.f32 %v1098_v5, %v998_v27  ;;  %v1790_v47 = vpop.f32.mrb[41].mxu0 }
 0x19b   :  { %v1134_v52 = vadd.f32 %v1388_v50, %v1122_v45 }
 0x19c   :  { %v1103_v41 = vpop.f32.mrb[42].mxu0 }
 0x19d   :  { %v1123_v53 = vadd.f32 %v1103_v41, %v999_v55  ;;  %v1793_v54 = vpop.f32.mrb[43].mxu0  ;;  %v1139_v57 = vmax.f32 %v1134_v52, 0.0 }
 0x19f   :  { %v1135_v56 = vadd.f32 %v1388_v50, %v1123_v53 }
 0x1a0   :  { %v1108_v43 = vpop.f32.mrb[44].mxu0 }
 0x1a1   :  { %v1140_v58 = vmax.f32 %v1135_v56, 0.0  ;;  %v1124_v60 = vadd.f32 %v1108_v43, %v1000_v33  ;;  %v1796_v61 = vpop.f32.mrb[45].mxu0 }
 0x1a3   :  { %v1144_v62 = vadd.f32 %v1140_v58, %v1139_v57  ;;  %v1136_v44 = vadd.f32 %v1388_v50, %v1124_v60 }
 0x1a4   :  { %v1113_v0 = vpop.f32.mrb[46].mxu0 }
 0x1a5   :  { %v1125_v1 = vadd.f32 %v1113_v0, %v1001_v38  ;;  %v1799_v2 = vpop.f32.mrb[47].mxu0  ;;  %v1141_v3 = vmax.f32 %v1136_v44, 0.0  ;;  %v1145_v10 = vrot.slane %v1144_v62, 4 }
 0x1a7   :  { %v1137_v6 = vadd.f32 %v1388_v50, %v1125_v1  ;;  %v1155_v11 = vrot.slane %v1141_v3, 2  ;;  %v1146_v15 = vadd.f32 %v1145_v10, %v1144_v62 }
 0x1a8   :  { %v1118_v7 = vpop.f32.mrb[48].mxu0 }
 0x1a9   :  { %v1142_v46 = vmax.f32 %v1137_v6, 0.0  ;;  %v1126_v8 = vadd.f32 %v1118_v7, %v1002_v39  ;;  %v1802_v9 = vpop.f32.mrb[49].mxu0  ;;  %v1147_v18 = vrot.slane %v1146_v15, 2 }
 0x1ab   :  { %v1156_v12 = vrot.slane %v1142_v46, 2  ;;  %v1138_v13 = vadd.f32 %v1388_v50, %v1126_v8  ;;  %v1148_v21 = vadd.f32 %v1147_v18, %v1146_v15 }
 0x1ad   :  { %v1157_v49 = vsel %vm1154_vm2, %v1155_v11, %v1156_v12  ;;  %v1143_v14 = vmax.f32 %v1138_v13, 0.0  ;;  %v1149_v24 = vrot.slane %v1148_v21, 1 }
 0x1af   :  { %v1158_v16 = vrot.slane %v1143_v14, 2  ;;  %v1150_v48 = vadd.f32 %v1149_v24, %v1148_v21 }
 0x1b1   :  { %v1159_v17 = vsel %vm1154_vm2, %v1156_v12, %v1158_v16 }
 0x1b2   :  { %v1162_v19 = vadd.f32 %v1159_v17, %v1157_v49 }
 0x1b4   :  { %v1163_v20 = vrot.slane %v1162_v19, 4 }
 0x1b6   :  { %v1164_v22 = vadd.f32 %v1163_v20, %v1162_v19 }
 0x1b8   :  { %v1165_v23 = vrot.slane %v1164_v22, 2 }
 0x1ba   :  { %v1166_v25 = vadd.f32 %v1165_v23, %v1164_v22 }
 0x1bc   :  { %v1167_v26 = vrot.slane %v1166_v25, 1 }
 0x1be   :  { %v1168_v27 = vadd.f32 %v1167_v26, %v1166_v25 }
 0x1c0   :  { %v1170_v28 = vsel %vm1169_vm3, %v1150_v48, %v1168_v27 }
 0x1c1   :  { %1836 = vmatmul.mubr.f32.vlgmr.msra.gmra.mrb[40].mxu1 %v1170_v28 }
 0x294   :  { %v1260_v29 = vpop.f32.mrb[40].mxu1 }
 0x295   :  { %v1261_v30 = vadd.f32 %v1389_v51, %v1260_v29  ;;  %v1837_v4 = vpop.f32.mrb[41].mxu1 }
 0x297   :  { %1264 = vst [vmem:[#allocation2] sm:$0x3] %v1261_v30 }
 0x298   :  { %1987 = shalt.err (!%p1984_p4)
}
 0x299   :  { %s1988_s6 = scalar_lea.hbm %s2687_s5, 32 }
 0x29a   :  { %p1989_p5 = scmp.ne.s32.totalorder %s2687_s5, %s1988_s6  ;;  %p1992_p6 = scmp.lt.u32.totalorder %s1988_s6, %s2687_s5 }
 0x29c   :  { %p1994_p7 = pnand %p1992_p6, %p1989_p5 }
 0x29e   :  { %1997 = shalt.err (!%p1994_p7)
}
 0x29f   :  { %1274 = dma.vmem_to_hbm [thread:$0]  %s1272_s27, 32, %s2687_s5, [#allocation3]  }
 0x2a0   :  { %1998 = dma.done.wait [#allocation3], 32  }
 0x2a1   :  { %1999 = vsyncadd [#allocation3], 4294967264 }
 0x2a2   :  { %1278 = vsyncpa [#allocation3], 1 }

</bundles_post_ra>
